<compile_context>
chip_gen: v6e
topology: v6e:2x2x1
jax: 0.10.0
libtpu: 0.0.40
codegen_flags: <defaults>
</compile_context>

<pallas_src>
import functools

import jax
import jax.numpy as jnp
from jax.experimental import pallas as pl
from jax.experimental.pallas import tpu as pltpu


def _mix32(x):
    """splitmix32-style finalizer: uint32 -> well-mixed uint32."""
    x = x ^ (x >> jnp.uint32(16))
    x = x * jnp.uint32(0x7FEB352D)
    x = x ^ (x >> jnp.uint32(15))
    x = x * jnp.uint32(0x846CA68B)
    x = x ^ (x >> jnp.uint32(16))
    return x


def _dropout_kernel(seed_ref, x_ref, o_ref, *, threshold, scale, block_rows, ncols):
    rows, cols = x_ref.shape

    # Global element index (invariant to the tiling) drives the hash, so every
    # grid step gets an independent mask from the same scalar seed.
    row = jax.lax.broadcasted_iota(jnp.int32, (rows, cols), 0).astype(jnp.uint32)
    col = jax.lax.broadcasted_iota(jnp.int32, (rows, cols), 1).astype(jnp.uint32)
    blk = pl.program_id(0).astype(jnp.uint32)
    grow = row + jnp.uint32(block_rows) * blk
    gidx = grow * jnp.uint32(ncols) + col

    seed = seed_ref[0].astype(jnp.uint32)
    key = gidx ^ (seed * jnp.uint32(0x9E3779B1) + jnp.uint32(0x85EBCA6B))
    bits = _mix32(_mix32(key))

    # Keep with probability (1 - p): exact uint32 threshold compare.
    keep = bits >= jnp.uint32(threshold)

    x = x_ref[...]
    o_ref[...] = jnp.where(keep, x * jnp.asarray(scale, x.dtype), jnp.zeros_like(x))


def _dropout_2d(x2d, seed_arr, p):
    R, C = x2d.shape

    # Small inputs: one whole-array block (Mosaic pads sub-(8,128) internally).
    # Large inputs: row-tiled grid; 512 rows * C lanes keeps double-buffered
    # in+out blocks comfortably under v7x's 64 MiB VMEM for typical C.
    if R <= 512:
        block_rows = R
    else:
        block_rows = 512  # multiple of 8, full lane dim -> (8,128)-legal
    grid = (pl.cdiv(R, block_rows),)

    threshold = min(int(round(p * (1 << 32))), (1 << 32) - 1)
    scale = 1.0 / (1.0 - p)

    kernel = functools.partial(
        _dropout_kernel,
        threshold=threshold,
        scale=scale,
        block_rows=block_rows,
        ncols=C,
    )

    return pl.pallas_call(
        kernel,
        out_shape=jax.ShapeDtypeStruct((R, C), x2d.dtype),
        grid=grid,
        in_specs=[
            pl.BlockSpec(memory_space=pltpu.SMEM),             # seed scalar
            pl.BlockSpec((block_rows, C), lambda i: (i, 0)),   # x tile (VMEM)
        ],
        out_specs=pl.BlockSpec((block_rows, C), lambda i: (i, 0)),
    )(seed_arr, x2d)


@functools.partial(jax.jit, static_argnames=("p",))
def dropout_pallas(x, seed, p=0.5):
    """Matches F.dropout(x, p, training=True) (inverted dropout)."""
    if p == 0.0:
        return x
    orig_shape = x.shape
    last = orig_shape[-1] if x.ndim >= 1 else 1
    x2d = x.reshape(-1, last)
    seed_arr = jnp.asarray(seed, dtype=jnp.int32).reshape(1)
    out2d = _dropout_2d(x2d, seed_arr, p)
    return out2d.reshape(orig_shape)


if __name__ == "__main__":
    key = jax.random.PRNGKey(0)
    x1 = jax.random.normal(key, (1, 2, 2), dtype=jnp.float32)  # matches torch.randn(1, 2, 2)

    y = dropout_pallas(x1, 0, p=0.5)
    jax.block_until_ready(y)

    # Sanity: every output element is either 0 or exactly 2*x (inverted dropout).
    assert y.shape == x1.shape and y.dtype == x1.dtype
    ok = jnp.all((y == 0.0) | jnp.isclose(y, 2.0 * x1, rtol=1e-6, atol=1e-6))
    assert bool(ok), "dropout output not in {0, 2*x}"

    print("KERNEL_OK")
</pallas_src>

<mosaic_0001>
module attributes {stable_mosaic.version = 11 : i64} {
  func.func @_dropout_kernel(%arg0: i32, %arg1: memref<1xi32, #tpu.memory_space<smem>>, %arg2: memref<2x2xf32, #tpu.memory_space<vmem>>, %arg3: memref<2x2xf32, #tpu.memory_space<vmem>>) attributes {dimension_semantics = [#tpu.dimension_semantics<arbitrary>], iteration_bounds = array<i64: 1>, scalar_prefetch = 0 : i64, scratch_operands = 0 : i64, tpu.core_type = #tpu.core_type<tc>, window_params = [{transform_indices = @transform_0, window_bounds = array<i64: 1>}, {transform_indices = @transform_1, window_bounds = array<i64: 2, 2>}, {transform_indices = @transform_2, window_bounds = array<i64: 2, 2>}]} {
    %0 = tpu.iota {dimensions = array<i32: 0>} : vector<2x2xi32>
    %1 = tpu.iota {dimensions = array<i32: 1>} : vector<2x2xi32>
    %c2_i32 = arith.constant 2 : i32
    %2 = arith.muli %c2_i32, %arg0 : i32
    %3 = vector.broadcast %2 : i32 to vector<2x2xi32>
    %4 = arith.addi %0, %3 : vector<2x2xi32>
    %c2_i32_0 = arith.constant 2 : i32
    %5 = vector.broadcast %c2_i32_0 : i32 to vector<2x2xi32>
    %6 = arith.muli %4, %5 : vector<2x2xi32>
    %7 = arith.addi %6, %1 : vector<2x2xi32>
    %c0 = arith.constant 0 : index
    %8 = memref.load %arg1[%c0] : memref<1xi32, #tpu.memory_space<smem>>
    %c-1640531535_i32 = arith.constant -1640531535 : i32
    %9 = arith.muli %8, %c-1640531535_i32 : i32
    %c-2048144789_i32 = arith.constant -2048144789 : i32
    %10 = arith.addi %9, %c-2048144789_i32 : i32
    %11 = vector.broadcast %10 : i32 to vector<2x2xi32>
    %12 = arith.xori %7, %11 : vector<2x2xi32>
    %c16_i32 = arith.constant 16 : i32
    %13 = vector.broadcast %c16_i32 : i32 to vector<2x2xi32>
    %14 = arith.shrui %12, %13 : vector<2x2xi32>
    %15 = arith.xori %12, %14 : vector<2x2xi32>
    %c2146121005_i32 = arith.constant 2146121005 : i32
    %16 = vector.broadcast %c2146121005_i32 : i32 to vector<2x2xi32>
    %17 = arith.muli %15, %16 : vector<2x2xi32>
    %c15_i32 = arith.constant 15 : i32
    %18 = vector.broadcast %c15_i32 : i32 to vector<2x2xi32>
    %19 = arith.shrui %17, %18 : vector<2x2xi32>
    %20 = arith.xori %17, %19 : vector<2x2xi32>
    %c-2073254261_i32 = arith.constant -2073254261 : i32
    %21 = vector.broadcast %c-2073254261_i32 : i32 to vector<2x2xi32>
    %22 = arith.muli %20, %21 : vector<2x2xi32>
    %c16_i32_1 = arith.constant 16 : i32
    %23 = vector.broadcast %c16_i32_1 : i32 to vector<2x2xi32>
    %24 = arith.shrui %22, %23 : vector<2x2xi32>
    %25 = arith.xori %22, %24 : vector<2x2xi32>
    %c16_i32_2 = arith.constant 16 : i32
    %26 = vector.broadcast %c16_i32_2 : i32 to vector<2x2xi32>
    %27 = arith.shrui %25, %26 : vector<2x2xi32>
    %28 = arith.xori %25, %27 : vector<2x2xi32>
    %c2146121005_i32_3 = arith.constant 2146121005 : i32
    %29 = vector.broadcast %c2146121005_i32_3 : i32 to vector<2x2xi32>
    %30 = arith.muli %28, %29 : vector<2x2xi32>
    %c15_i32_4 = arith.constant 15 : i32
    %31 = vector.broadcast %c15_i32_4 : i32 to vector<2x2xi32>
    %32 = arith.shrui %30, %31 : vector<2x2xi32>
    %33 = arith.xori %30, %32 : vector<2x2xi32>
    %c-2073254261_i32_5 = arith.constant -2073254261 : i32
    %34 = vector.broadcast %c-2073254261_i32_5 : i32 to vector<2x2xi32>
    %35 = arith.muli %33, %34 : vector<2x2xi32>
    %c16_i32_6 = arith.constant 16 : i32
    %36 = vector.broadcast %c16_i32_6 : i32 to vector<2x2xi32>
    %37 = arith.shrui %35, %36 : vector<2x2xi32>
    %38 = arith.xori %35, %37 : vector<2x2xi32>
    %c-2147483648_i32 = arith.constant -2147483648 : i32
    %39 = vector.broadcast %c-2147483648_i32 : i32 to vector<2x2xi32>
    %40 = arith.cmpi uge, %38, %39 : vector<2x2xi32>
    %c0_7 = arith.constant 0 : index
    %c0_8 = arith.constant 0 : index
    %41 = vector.load %arg2[%c0_7, %c0_8] : memref<2x2xf32, #tpu.memory_space<vmem>>, vector<2x2xf32>
    %cst = arith.constant 2.000000e+00 : f32
    %42 = vector.broadcast %cst : f32 to vector<2x2xf32>
    %43 = arith.mulf %41, %42 : vector<2x2xf32>
    %cst_9 = arith.constant 0.000000e+00 : f32
    %44 = vector.broadcast %cst_9 : f32 to vector<2x2xf32>
    %45 = arith.select %40, %43, %44 : vector<2x2xi1>, vector<2x2xf32>
    %c0_10 = arith.constant 0 : index
    %c0_11 = arith.constant 0 : index
    %46 = vector.load %arg3[%c0_10, %c0_11] : memref<2x2xf32, #tpu.memory_space<vmem>>, vector<2x2xf32>
    tpu.vector_store %arg3[%c0_10, %c0_11], %45 {strides = array<i32>} : memref<2x2xf32, #tpu.memory_space<vmem>>, vector<2x2xf32>,
    return
  }
  func.func @transform_0(%arg0: i32) -> i32 {
    %c0_i32 = arith.constant 0 : i32
    %c0_i32_0 = arith.constant 0 : i32
    return %c0_i32 : i32
  }
  func.func @transform_1(%arg0: i32) -> (i32, i32) {
    %c0_i32 = arith.constant 0 : i32
    %c0_i32_0 = arith.constant 0 : i32
    return %arg0, %c0_i32 : i32, i32
  }
  func.func @transform_2(%arg0: i32) -> (i32, i32) {
    %c0_i32 = arith.constant 0 : i32
    %c0_i32_0 = arith.constant 0 : i32
    return %arg0, %c0_i32 : i32, i32
  }
}

</mosaic_0001>

<bundles_post_ra>
// kernel: dropout_pallas.1
= control target key start
LH: loop header
LB: loop body
LE: loop exit
PB: predicated region body
PF: predicated region fallthrough
CT: control target
= control target key end

     0   :  { %v13_v0 = vlaneseq  ;;  %s111_s0 = inlined_call_operand.<no memory space> [shape: s32[1], index: 0, kind: input, shape index: {}]   ;;  %s112_s1 = inlined_call_operand.vmem [shape: f32[2,2], index: 1, kind: input, shape index: {}]   ;;  %s113_s2 = inlined_call_operand.hbm [shape: f32[2,2], index: 2, kind: output, shape index: {}]  }
   0x1   :  { %s23_s11 = smul.u32 2654435761, %s111_s0 }
   0x2   :  { %8 = vsyncpa [#allocation4], 0  ;;  %v14_v1 = vshrl.u32 %v13_v0, 7  ;;  %v16_v2 = vand.u32 127, %v13_v0  ;;  %v44_v21 = vld [vmem:[%s112_s1] sm:$0x3] }
   0x3   :  { %s24_s12 = sadd.s32 2246822507, %s23_s11  ;;  %v45_v23 = vmul.f32 2.0, %v44_v21  ;;  %s86_s14 = smov [#allocation3]   ;;  %vm47_vm0 = vcmask 9216  }
   0x4   :  { %v20_v3 = vmul.u32 2, %v14_v1  ;;  %v25_v4 = vstv %s24_s12  ;;  %s55_s15 = sshll.u32 %s86_s14, 4  ;;  %s56_s15 = int_to_ptr.vmem [resolvable:$true] %s55_s15 }
   0x5   :  { %s64_s16 = scalar_lea.vmem %s56_s15, 32  ;;  %p69_p1 = scmp.lt.s32.totalorder %s56_s15, %s56_s15 }
   0x6   :  { %v21_v5 = vadd.s32 %v20_v3, %v16_v2  ;;  %p65_p0 = scmp.ne.s32.totalorder %s56_s15, %s64_s16  ;;  %p70_p2 = scmp.lt.s32.totalorder %s64_s16, %s64_s16 }
   0x8   :  { %v26_v6 = vxor.u32 %v25_v4, %v21_v5  ;;  %p71_p3 = por %p70_p2, %p69_p1 }
   0xa   :  { %v27_v7 = vshrl.u32 %v26_v6, 16  ;;  %p72_p4 = pnand %p71_p3, %p65_p0 }
   0xc   :  { %v28_v8 = vxor.u32 %v27_v7, %v26_v6 }
   0xe   :  { %v29_v9 = vmul.u32 2146121005, %v28_v8 }
  0x10   :  { %v30_v10 = vshrl.u32 %v29_v9, 15 }
  0x12   :  { %v31_v11 = vxor.u32 %v30_v10, %v29_v9 }
  0x14   :  { %v32_v12 = vmul.u32 2221713035, %v31_v11 }
  0x16   :  { %v33_v13 = vshrl.u32 %v32_v12, 16 }
  0x18   :  { %v34_v14 = vxor.u32 %v33_v13, %v32_v12 }
  0x1a   :  { %v35_v15 = vshrl.u32 %v34_v14, 16 }
  0x1c   :  { %v36_v16 = vxor.u32 %v35_v15, %v34_v14 }
  0x1e   :  { %v37_v17 = vmul.u32 2146121005, %v36_v16 }
  0x20   :  { %v38_v18 = vshrl.u32 %v37_v17, 15 }
  0x22   :  { %v39_v19 = vxor.u32 %v38_v18, %v37_v17 }
  0x24   :  { %v40_v20 = vmul.u32 2221713035, %v39_v19 }
  0x26   :  { %v41_v22 = vshrl.u32 %v40_v20, 16 }
  0x28   :  { %v42_v24 = vxor.u32 %v41_v22, %v40_v20 }
  0x2a   :  { %vm43_vm1 = vcmp.ge.u32.totalorder %v42_v24, 2147483648 }
  0x2b   :  { %v46_v25 = vsel %vm43_vm1, %v45_v23, 0.0 }
  0x2c   :  { %48 = vst.msk [vmem:[#allocation3] sm:$0x3] %vm47_vm0, %v46_v25 }
  0x2d   :  { %75 = shalt.err (!%p72_p4)
}
  0x2e   :  { %58 = dma.vmem_to_hbm [thread:$0]  %s56_s15, 32, %s113_s2, [#allocation4]  }
  0x2f   :  { %84 = dma.done.wait [#allocation4], 32  }
  0x30   :  { %85 = vsyncadd [#allocation4], 4294967264 }
  0x31   :  { %62 = vsyncpa [#allocation4], 1 }

</bundles_post_ra>
